<compile_context>
chip_gen: v6e
topology: v6e:2x2x1
jax: 0.10.0
libtpu: 0.0.40
codegen_flags: <defaults>
</compile_context>

<pallas_src>
import functools

import jax
import jax.numpy as jnp
from jax.experimental import pallas as pl
from jax.experimental.pallas import tpu as pltpu


def dqn_kernel(states_ref, nrows_ref, invn_ref,
               w1_ref, wslab_ref, wh2_ref, bias_ref,
               out_ref, gath_ref,
               *, hid, out_size, max_batch):
    # Pre-broadcast bias slab: (max_batch, 5*hid) f32, static lane-aligned slices.
    b1  = bias_ref[:, 0:hid]             # (MAXB, 128)
    b2  = bias_ref[:, hid:2 * hid]       # (MAXB, 128)
    bh1 = bias_ref[:, 2 * hid:4 * hid]   # (MAXB, 256)  = [bv1 | ba1]
    bh2 = bias_ref[:, 4 * hid:5 * hid]   # (MAXB, 128)  = [ba2 | bv2 | 0...]

    # First layer as a gather: x is one-hot(state) => x @ W1 == W1[state].
    # Static unrolled loop over max_batch rows; only the W1 row index is dynamic.
    for i in range(max_batch):
        s = states_ref[i]                                  # SMEM scalar (int32)
        gath_ref[pl.ds(i, 1), :] = w1_ref[s]               # (1, hid) f32 row

    h1 = jnp.maximum(gath_ref[...] + b1, 0.0).astype(jnp.bfloat16)

    # feature layer 2: (MAXB,128) @ (128,128)
    feat = jnp.maximum(
        jnp.dot(h1, wslab_ref[:, 0:hid],
                preferred_element_type=jnp.float32) + b2, 0.0
    ).astype(jnp.bfloat16)

    # fused value || advantage hidden layer: (MAXB,128) @ (128,256)
    hh = jnp.maximum(
        jnp.dot(feat, wslab_ref[:, hid:],
                preferred_element_type=jnp.float32) + bh1, 0.0
    ).astype(jnp.bfloat16)

    # fused second stage: (MAXB,256) @ (256,128) -> lane-dense head tile.
    #   cols [0, OUT) : advantages,  col OUT : value,  cols > OUT : exactly zero
    head = jnp.dot(hh, wh2_ref[...], preferred_element_type=jnp.float32) + bh2

    # Global advantage mean over the real (nrows, out_size) block.  Columns
    # >= out_size are exact zeros by construction, so only a row mask is needed;
    # the value column (index out_size) is subtracted out of the masked sum.
    nrows = nrows_ref[0]
    row_mask = jax.lax.broadcasted_iota(jnp.int32, (max_batch, 1), 0) < nrows
    head_m = jnp.where(row_mask, head, 0.0)
    adv_sum = jnp.sum(head_m) - jnp.sum(head_m[:, out_size:out_size + 1])
    adv_mean = adv_sum * invn_ref[0]

    value = head[:, out_size:out_size + 1]                 # (MAXB, 1)

    # Dueling combine, full 128-lane-dense store; columns >= OUT and rows >= nrows
    # hold junk and are sliced away in the wrapper.
    out_ref[...] = value + (head - adv_mean)


def dqn_forward(states, packed):
    """states: int32 (B,) FrozenLake state indices, B <= packed['max_batch']."""
    maxb = packed["max_batch"]
    hid = packed["hid"]
    out_size = packed["out_size"]
    b = states.shape[0]
    assert b <= maxb, "batch larger than the compiled max_batch"

    states = states.astype(jnp.int32)
    if b < maxb:                          # pad with state 0 (valid index)
        states = jnp.concatenate([states, jnp.zeros((maxb - b,), jnp.int32)])
    nrows = jnp.full((1,), b, jnp.int32)
    inv_n = jnp.full((1,), 1.0 / float(b * out_size), jnp.float32)

    kernel = functools.partial(dqn_kernel, hid=hid, out_size=out_size,
                               max_batch=maxb)
    smem = pl.BlockSpec(memory_space=pltpu.MemorySpace.SMEM)
    vmem = pl.BlockSpec(memory_space=pltpu.MemorySpace.VMEM)

    out = pl.pallas_call(
        kernel,
        out_shape=jax.ShapeDtypeStruct((maxb, hid), jnp.float32),
        in_specs=[smem, smem, smem, vmem, vmem, vmem, vmem],
        out_specs=vmem,
        scratch_shapes=[pltpu.VMEM((maxb, hid), jnp.float32)],
    )(states, nrows, inv_n,
      packed["w1"], packed["w_slab"], packed["wh2"], packed["bias_slab"])

    return out[:b, :out_size]


def init_params(key, in_size, hidden, out_size):
    # Deterministic synthetic init (PyTorch-style fan_in uniform).
    # Weights stored as (in_features, out_features) so forward is x @ W + b.
    def linear(key, fan_in, fan_out):
        kw, kb = jax.random.split(key)
        bound = 1.0 / (fan_in ** 0.5)
        w = jax.random.uniform(kw, (fan_in, fan_out), jnp.float32, -bound, bound)
        b = jax.random.uniform(kb, (1, fan_out), jnp.float32, -bound, bound)
        return w, b

    keys = jax.random.split(key, 6)
    w1, b1 = linear(keys[0], in_size, hidden)
    w2, b2 = linear(keys[1], hidden, hidden)
    wv1, bv1 = linear(keys[2], hidden, hidden)
    wv2, bv2 = linear(keys[3], hidden, 1)
    wa1, ba1 = linear(keys[4], hidden, hidden)
    wa2, ba2 = linear(keys[5], hidden, out_size)
    return dict(w1=w1, b1=b1, w2=w2, b2=b2,
                wv1=wv1, bv1=bv1, wv2=wv2, bv2=bv2,
                wa1=wa1, ba1=ba1, wa2=wa2, ba2=ba2)


def pack_params(p, out_size, max_batch):
    """One-time packing: 12 raw tensors -> 4 fused / lane-dense / bf16 slabs."""
    hid = p["w2"].shape[0]
    in_size = p["w1"].shape[0]

    # W1 kept f32, reshaped (IN, 1, HID) so the kernel can gather rows with a
    # dynamic leading-dim index (FrozenLake one-hot input => first matmul removed).
    w1 = p["w1"].reshape(in_size, 1, hid)

    # weight slab: [w2 | wv1 | wa1] -> (128, 384) bf16
    w_slab = jnp.concatenate([p["w2"], p["wv1"], p["wa1"]],
                             axis=1).astype(jnp.bfloat16)

    # block-diagonal fused head-2 weight: (256, 128) bf16
    wh2 = jnp.zeros((2 * hid, hid), jnp.float32)
    wh2 = wh2.at[hid:, :out_size].set(p["wa2"])        # adv-hidden   -> cols [0,OUT)
    wh2 = wh2.at[:hid, out_size].set(p["wv2"][:, 0])   # value-hidden -> col OUT
    wh2 = wh2.astype(jnp.bfloat16)

    # bias slab, pre-broadcast to max_batch sublanes: (MAXB, 640) f32
    bh2 = jnp.zeros((1, hid), jnp.float32)
    bh2 = bh2.at[0, :out_size].set(p["ba2"][0])
    bh2 = bh2.at[0, out_size].set(p["bv2"][0, 0])
    bias_row = jnp.concatenate(
        [p["b1"], p["b2"], p["bv1"], p["ba1"], bh2], axis=1)   # (1, 5*hid)
    bias_slab = jnp.tile(bias_row, (max_batch, 1))             # (MAXB, 5*hid)

    return dict(w1=w1, w_slab=w_slab, wh2=wh2, bias_slab=bias_slab,
                hid=hid, out_size=out_size, max_batch=max_batch)


def dqn_reference(x, p):
    """Pure-JAX reference with the kernel's weight quantization (bf16 second-stage
    weights, f32 w1/biases); activations stay f32, so the kernel only differs by
    bf16 activation rounding (< ~1e-3 here)."""
    q = lambda w: w.astype(jnp.bfloat16).astype(jnp.float32)
    relu = lambda t: jnp.maximum(t, 0.0)
    feat = relu(relu(x @ p["w1"] + p["b1"]) @ q(p["w2"]) + p["b2"])
    values = relu(feat @ q(p["wv1"]) + p["bv1"]) @ q(p["wv2"]) + p["bv2"]
    adv = relu(feat @ q(p["wa1"]) + p["ba1"]) @ q(p["wa2"]) + p["ba2"]
    return values + (adv - jnp.mean(adv))


if __name__ == "__main__":
    # FrozenLake 4x4: in_size=16 (one-hot state), out_size=4 actions.
    IN, HID, OUT = 16, 128, 4
    MAXB = 16          # fixed batch tile (full bf16 sublane tile); B<=MAXB reuses it
    key = jax.random.PRNGKey(0)
    k_s, k_p = jax.random.split(key)

    raw_params = init_params(k_p, IN, HID, OUT)
    packed_params = pack_params(raw_params, OUT, MAXB)

    # Full batch and a partial replay minibatch hit the SAME compiled kernel
    # (batch size is a runtime SMEM scalar; only shapes up to MAXB are compiled).
    for B in (MAXB, 5):
        states = jax.random.randint(jax.random.fold_in(k_s, B), (B,), 0, IN)
        q = dqn_forward(states, packed_params)
        q = jax.block_until_ready(q)

        x = jax.nn.one_hot(states, IN, dtype=jnp.float32)
        q_ref = dqn_reference(x, raw_params)
        assert q.shape == (B, OUT)
        assert jnp.allclose(q, q_ref, atol=2e-2, rtol=2e-2), (
            f"mismatch at B={B}: max abs err {jnp.max(jnp.abs(q - q_ref))}")

    print("KERNEL_OK")
</pallas_src>

<mosaic_0001>
module attributes {stable_mosaic.version = 11 : i64} {
  func.func @dqn_kernel(%arg0: memref<16xi32, #tpu.memory_space<smem>>, %arg1: memref<1xi32, #tpu.memory_space<smem>>, %arg2: memref<1xf32, #tpu.memory_space<smem>>, %arg3: memref<16x1x128xf32, #tpu.memory_space<vmem>>, %arg4: memref<128x384xbf16, #tpu.memory_space<vmem>>, %arg5: memref<256x128xbf16, #tpu.memory_space<vmem>>, %arg6: memref<16x640xf32, #tpu.memory_space<vmem>>, %arg7: memref<16x128xf32, #tpu.memory_space<vmem>>, %arg8: memref<16x128xf32, #tpu.memory_space<vmem>>) attributes {dimension_semantics = [], scalar_prefetch = 0 : i64, scratch_operands = 1 : i64, tpu.core_type = #tpu.core_type<tc>} {
    %c0 = arith.constant 0 : index
    %c0_0 = arith.constant 0 : index
    %0 = vector.load %arg6[%c0, %c0_0] : memref<16x640xf32, #tpu.memory_space<vmem>>, vector<16x128xf32>
    %c0_1 = arith.constant 0 : index
    %c128 = arith.constant 128 : index
    %1 = vector.load %arg6[%c0_1, %c128] : memref<16x640xf32, #tpu.memory_space<vmem>>, vector<16x128xf32>
    %c0_2 = arith.constant 0 : index
    %c256 = arith.constant 256 : index
    %2 = vector.load %arg6[%c0_2, %c256] : memref<16x640xf32, #tpu.memory_space<vmem>>, vector<16x256xf32>
    %c0_3 = arith.constant 0 : index
    %c512 = arith.constant 512 : index
    %3 = vector.load %arg6[%c0_3, %c512] : memref<16x640xf32, #tpu.memory_space<vmem>>, vector<16x128xf32>
    %c0_4 = arith.constant 0 : index
    %4 = memref.load %arg0[%c0_4] : memref<16xi32, #tpu.memory_space<smem>>
    %5 = arith.index_cast %4 : i32 to index
    %c0_5 = arith.constant 0 : index
    %c0_6 = arith.constant 0 : index
    %6 = vector.load %arg3[%5, %c0_5, %c0_6] : memref<16x1x128xf32, #tpu.memory_space<vmem>>, vector<1x1x128xf32>
    %7 = vector.shape_cast %6 : vector<1x1x128xf32> to vector<1x128xf32>
    %c0_7 = arith.constant 0 : index
    %c0_8 = arith.constant 0 : index
    %8 = vector.load %arg8[%c0_7, %c0_8] : memref<16x128xf32, #tpu.memory_space<vmem>>, vector<1x128xf32>
    tpu.vector_store %arg8[%c0_7, %c0_8], %7 {strides = array<i32>} : memref<16x128xf32, #tpu.memory_space<vmem>>, vector<1x128xf32>,
    %c1 = arith.constant 1 : index
    %9 = memref.load %arg0[%c1] : memref<16xi32, #tpu.memory_space<smem>>
    %10 = arith.index_cast %9 : i32 to index
    %c0_9 = arith.constant 0 : index
    %c0_10 = arith.constant 0 : index
    %11 = vector.load %arg3[%10, %c0_9, %c0_10] : memref<16x1x128xf32, #tpu.memory_space<vmem>>, vector<1x1x128xf32>
    %12 = vector.shape_cast %11 : vector<1x1x128xf32> to vector<1x128xf32>
    %c1_11 = arith.constant 1 : index
    %c0_12 = arith.constant 0 : index
    %13 = vector.load %arg8[%c1_11, %c0_12] : memref<16x128xf32, #tpu.memory_space<vmem>>, vector<1x128xf32>
    tpu.vector_store %arg8[%c1_11, %c0_12], %12 {strides = array<i32>} : memref<16x128xf32, #tpu.memory_space<vmem>>, vector<1x128xf32>,
    %c2 = arith.constant 2 : index
    %14 = memref.load %arg0[%c2] : memref<16xi32, #tpu.memory_space<smem>>
    %15 = arith.index_cast %14 : i32 to index
    %c0_13 = arith.constant 0 : index
    %c0_14 = arith.constant 0 : index
    %16 = vector.load %arg3[%15, %c0_13, %c0_14] : memref<16x1x128xf32, #tpu.memory_space<vmem>>, vector<1x1x128xf32>
    %17 = vector.shape_cast %16 : vector<1x1x128xf32> to vector<1x128xf32>
    %c2_15 = arith.constant 2 : index
    %c0_16 = arith.constant 0 : index
    %18 = vector.load %arg8[%c2_15, %c0_16] : memref<16x128xf32, #tpu.memory_space<vmem>>, vector<1x128xf32>
    tpu.vector_store %arg8[%c2_15, %c0_16], %17 {strides = array<i32>} : memref<16x128xf32, #tpu.memory_space<vmem>>, vector<1x128xf32>,
    %c3 = arith.constant 3 : index
    %19 = memref.load %arg0[%c3] : memref<16xi32, #tpu.memory_space<smem>>
    %20 = arith.index_cast %19 : i32 to index
    %c0_17 = arith.constant 0 : index
    %c0_18 = arith.constant 0 : index
    %21 = vector.load %arg3[%20, %c0_17, %c0_18] : memref<16x1x128xf32, #tpu.memory_space<vmem>>, vector<1x1x128xf32>
    %22 = vector.shape_cast %21 : vector<1x1x128xf32> to vector<1x128xf32>
    %c3_19 = arith.constant 3 : index
    %c0_20 = arith.constant 0 : index
    %23 = vector.load %arg8[%c3_19, %c0_20] : memref<16x128xf32, #tpu.memory_space<vmem>>, vector<1x128xf32>
    tpu.vector_store %arg8[%c3_19, %c0_20], %22 {strides = array<i32>} : memref<16x128xf32, #tpu.memory_space<vmem>>, vector<1x128xf32>,
    %c4 = arith.constant 4 : index
    %24 = memref.load %arg0[%c4] : memref<16xi32, #tpu.memory_space<smem>>
    %25 = arith.index_cast %24 : i32 to index
    %c0_21 = arith.constant 0 : index
    %c0_22 = arith.constant 0 : index
    %26 = vector.load %arg3[%25, %c0_21, %c0_22] : memref<16x1x128xf32, #tpu.memory_space<vmem>>, vector<1x1x128xf32>
    %27 = vector.shape_cast %26 : vector<1x1x128xf32> to vector<1x128xf32>
    %c4_23 = arith.constant 4 : index
    %c0_24 = arith.constant 0 : index
    %28 = vector.load %arg8[%c4_23, %c0_24] : memref<16x128xf32, #tpu.memory_space<vmem>>, vector<1x128xf32>
    tpu.vector_store %arg8[%c4_23, %c0_24], %27 {strides = array<i32>} : memref<16x128xf32, #tpu.memory_space<vmem>>, vector<1x128xf32>,
    %c5 = arith.constant 5 : index
    %29 = memref.load %arg0[%c5] : memref<16xi32, #tpu.memory_space<smem>>
    %30 = arith.index_cast %29 : i32 to index
    %c0_25 = arith.constant 0 : index
    %c0_26 = arith.constant 0 : index
    %31 = vector.load %arg3[%30, %c0_25, %c0_26] : memref<16x1x128xf32, #tpu.memory_space<vmem>>, vector<1x1x128xf32>
    %32 = vector.shape_cast %31 : vector<1x1x128xf32> to vector<1x128xf32>
    %c5_27 = arith.constant 5 : index
    %c0_28 = arith.constant 0 : index
    %33 = vector.load %arg8[%c5_27, %c0_28] : memref<16x128xf32, #tpu.memory_space<vmem>>, vector<1x128xf32>
    tpu.vector_store %arg8[%c5_27, %c0_28], %32 {strides = array<i32>} : memref<16x128xf32, #tpu.memory_space<vmem>>, vector<1x128xf32>,
    %c6 = arith.constant 6 : index
    %34 = memref.load %arg0[%c6] : memref<16xi32, #tpu.memory_space<smem>>
    %35 = arith.index_cast %34 : i32 to index
    %c0_29 = arith.constant 0 : index
    %c0_30 = arith.constant 0 : index
    %36 = vector.load %arg3[%35, %c0_29, %c0_30] : memref<16x1x128xf32, #tpu.memory_space<vmem>>, vector<1x1x128xf32>
    %37 = vector.shape_cast %36 : vector<1x1x128xf32> to vector<1x128xf32>
    %c6_31 = arith.constant 6 : index
    %c0_32 = arith.constant 0 : index
    %38 = vector.load %arg8[%c6_31, %c0_32] : memref<16x128xf32, #tpu.memory_space<vmem>>, vector<1x128xf32>
    tpu.vector_store %arg8[%c6_31, %c0_32], %37 {strides = array<i32>} : memref<16x128xf32, #tpu.memory_space<vmem>>, vector<1x128xf32>,
    %c7 = arith.constant 7 : index
    %39 = memref.load %arg0[%c7] : memref<16xi32, #tpu.memory_space<smem>>
    %40 = arith.index_cast %39 : i32 to index
    %c0_33 = arith.constant 0 : index
    %c0_34 = arith.constant 0 : index
    %41 = vector.load %arg3[%40, %c0_33, %c0_34] : memref<16x1x128xf32, #tpu.memory_space<vmem>>, vector<1x1x128xf32>
    %42 = vector.shape_cast %41 : vector<1x1x128xf32> to vector<1x128xf32>
    %c7_35 = arith.constant 7 : index
    %c0_36 = arith.constant 0 : index
    %43 = vector.load %arg8[%c7_35, %c0_36] : memref<16x128xf32, #tpu.memory_space<vmem>>, vector<1x128xf32>
    tpu.vector_store %arg8[%c7_35, %c0_36], %42 {strides = array<i32>} : memref<16x128xf32, #tpu.memory_space<vmem>>, vector<1x128xf32>,
    %c8 = arith.constant 8 : index
    %44 = memref.load %arg0[%c8] : memref<16xi32, #tpu.memory_space<smem>>
    %45 = arith.index_cast %44 : i32 to index
    %c0_37 = arith.constant 0 : index
    %c0_38 = arith.constant 0 : index
    %46 = vector.load %arg3[%45, %c0_37, %c0_38] : memref<16x1x128xf32, #tpu.memory_space<vmem>>, vector<1x1x128xf32>
    %47 = vector.shape_cast %46 : vector<1x1x128xf32> to vector<1x128xf32>
    %c8_39 = arith.constant 8 : index
    %c0_40 = arith.constant 0 : index
    %48 = vector.load %arg8[%c8_39, %c0_40] : memref<16x128xf32, #tpu.memory_space<vmem>>, vector<1x128xf32>
    tpu.vector_store %arg8[%c8_39, %c0_40], %47 {strides = array<i32>} : memref<16x128xf32, #tpu.memory_space<vmem>>, vector<1x128xf32>,
    %c9 = arith.constant 9 : index
    %49 = memref.load %arg0[%c9] : memref<16xi32, #tpu.memory_space<smem>>
    %50 = arith.index_cast %49 : i32 to index
    %c0_41 = arith.constant 0 : index
    %c0_42 = arith.constant 0 : index
    %51 = vector.load %arg3[%50, %c0_41, %c0_42] : memref<16x1x128xf32, #tpu.memory_space<vmem>>, vector<1x1x128xf32>
    %52 = vector.shape_cast %51 : vector<1x1x128xf32> to vector<1x128xf32>
    %c9_43 = arith.constant 9 : index
    %c0_44 = arith.constant 0 : index
    %53 = vector.load %arg8[%c9_43, %c0_44] : memref<16x128xf32, #tpu.memory_space<vmem>>, vector<1x128xf32>
    tpu.vector_store %arg8[%c9_43, %c0_44], %52 {strides = array<i32>} : memref<16x128xf32, #tpu.memory_space<vmem>>, vector<1x128xf32>,
    %c10 = arith.constant 10 : index
    %54 = memref.load %arg0[%c10] : memref<16xi32, #tpu.memory_space<smem>>
    %55 = arith.index_cast %54 : i32 to index
    %c0_45 = arith.constant 0 : index
    %c0_46 = arith.constant 0 : index
    %56 = vector.load %arg3[%55, %c0_45, %c0_46] : memref<16x1x128xf32, #tpu.memory_space<vmem>>, vector<1x1x128xf32>
    %57 = vector.shape_cast %56 : vector<1x1x128xf32> to vector<1x128xf32>
    %c10_47 = arith.constant 10 : index
    %c0_48 = arith.constant 0 : index
    %58 = vector.load %arg8[%c10_47, %c0_48] : memref<16x128xf32, #tpu.memory_space<vmem>>, vector<1x128xf32>
    tpu.vector_store %arg8[%c10_47, %c0_48], %57 {strides = array<i32>} : memref<16x128xf32, #tpu.memory_space<vmem>>, vector<1x128xf32>,
    %c11 = arith.constant 11 : index
    %59 = memref.load %arg0[%c11] : memref<16xi32, #tpu.memory_space<smem>>
    %60 = arith.index_cast %59 : i32 to index
    %c0_49 = arith.constant 0 : index
    %c0_50 = arith.constant 0 : index
    %61 = vector.load %arg3[%60, %c0_49, %c0_50] : memref<16x1x128xf32, #tpu.memory_space<vmem>>, vector<1x1x128xf32>
    %62 = vector.shape_cast %61 : vector<1x1x128xf32> to vector<1x128xf32>
    %c11_51 = arith.constant 11 : index
    %c0_52 = arith.constant 0 : index
    %63 = vector.load %arg8[%c11_51, %c0_52] : memref<16x128xf32, #tpu.memory_space<vmem>>, vector<1x128xf32>
    tpu.vector_store %arg8[%c11_51, %c0_52], %62 {strides = array<i32>} : memref<16x128xf32, #tpu.memory_space<vmem>>, vector<1x128xf32>,
    %c12 = arith.constant 12 : index
    %64 = memref.load %arg0[%c12] : memref<16xi32, #tpu.memory_space<smem>>
    %65 = arith.index_cast %64 : i32 to index
    %c0_53 = arith.constant 0 : index
    %c0_54 = arith.constant 0 : index
    %66 = vector.load %arg3[%65, %c0_53, %c0_54] : memref<16x1x128xf32, #tpu.memory_space<vmem>>, vector<1x1x128xf32>
    %67 = vector.shape_cast %66 : vector<1x1x128xf32> to vector<1x128xf32>
    %c12_55 = arith.constant 12 : index
    %c0_56 = arith.constant 0 : index
    %68 = vector.load %arg8[%c12_55, %c0_56] : memref<16x128xf32, #tpu.memory_space<vmem>>, vector<1x128xf32>
    tpu.vector_store %arg8[%c12_55, %c0_56], %67 {strides = array<i32>} : memref<16x128xf32, #tpu.memory_space<vmem>>, vector<1x128xf32>,
    %c13 = arith.constant 13 : index
    %69 = memref.load %arg0[%c13] : memref<16xi32, #tpu.memory_space<smem>>
    %70 = arith.index_cast %69 : i32 to index
    %c0_57 = arith.constant 0 : index
    %c0_58 = arith.constant 0 : index
    %71 = vector.load %arg3[%70, %c0_57, %c0_58] : memref<16x1x128xf32, #tpu.memory_space<vmem>>, vector<1x1x128xf32>
    %72 = vector.shape_cast %71 : vector<1x1x128xf32> to vector<1x128xf32>
    %c13_59 = arith.constant 13 : index
    %c0_60 = arith.constant 0 : index
    %73 = vector.load %arg8[%c13_59, %c0_60] : memref<16x128xf32, #tpu.memory_space<vmem>>, vector<1x128xf32>
    tpu.vector_store %arg8[%c13_59, %c0_60], %72 {strides = array<i32>} : memref<16x128xf32, #tpu.memory_space<vmem>>, vector<1x128xf32>,
    %c14 = arith.constant 14 : index
    %74 = memref.load %arg0[%c14] : memref<16xi32, #tpu.memory_space<smem>>
    %75 = arith.index_cast %74 : i32 to index
    %c0_61 = arith.constant 0 : index
    %c0_62 = arith.constant 0 : index
    %76 = vector.load %arg3[%75, %c0_61, %c0_62] : memref<16x1x128xf32, #tpu.memory_space<vmem>>, vector<1x1x128xf32>
    %77 = vector.shape_cast %76 : vector<1x1x128xf32> to vector<1x128xf32>
    %c14_63 = arith.constant 14 : index
    %c0_64 = arith.constant 0 : index
    %78 = vector.load %arg8[%c14_63, %c0_64] : memref<16x128xf32, #tpu.memory_space<vmem>>, vector<1x128xf32>
    tpu.vector_store %arg8[%c14_63, %c0_64], %77 {strides = array<i32>} : memref<16x128xf32, #tpu.memory_space<vmem>>, vector<1x128xf32>,
    %c15 = arith.constant 15 : index
    %79 = memref.load %arg0[%c15] : memref<16xi32, #tpu.memory_space<smem>>
    %80 = arith.index_cast %79 : i32 to index
    %c0_65 = arith.constant 0 : index
    %c0_66 = arith.constant 0 : index
    %81 = vector.load %arg3[%80, %c0_65, %c0_66] : memref<16x1x128xf32, #tpu.memory_space<vmem>>, vector<1x1x128xf32>
    %82 = vector.shape_cast %81 : vector<1x1x128xf32> to vector<1x128xf32>
    %c15_67 = arith.constant 15 : index
    %c0_68 = arith.constant 0 : index
    %83 = vector.load %arg8[%c15_67, %c0_68] : memref<16x128xf32, #tpu.memory_space<vmem>>, vector<1x128xf32>
    tpu.vector_store %arg8[%c15_67, %c0_68], %82 {strides = array<i32>} : memref<16x128xf32, #tpu.memory_space<vmem>>, vector<1x128xf32>,
    %c0_69 = arith.constant 0 : index
    %c0_70 = arith.constant 0 : index
    %84 = vector.load %arg8[%c0_69, %c0_70] : memref<16x128xf32, #tpu.memory_space<vmem>>, vector<16x128xf32>
    %85 = arith.addf %84, %0 : vector<16x128xf32>
    %cst = arith.constant 0.000000e+00 : f32
    %86 = vector.broadcast %cst : f32 to vector<16x128xf32>
    %87 = arith.maximumf %85, %86 : vector<16x128xf32>
    %88 = arith.truncf %87 : vector<16x128xf32> to vector<16x128xbf16>
    %c0_71 = arith.constant 0 : index
    %c0_72 = arith.constant 0 : index
    %89 = vector.load %arg4[%c0_71, %c0_72] : memref<128x384xbf16, #tpu.memory_space<vmem>>, vector<128x128xbf16>
    %cst_73 = arith.constant dense<0.000000e+00> : vector<16x128xf32>
    %90 = tpu.matmul %88, %89, %cst_73 {dimension_numbers = #tpu.dot_dimension_numbers<[1], [0], [0], [1], [0, 0, 1, 1], [], []>} : vector<16x128xbf16>, vector<128x128xbf16>, vector<16x128xf32> -> vector<16x128xf32>
    %91 = arith.addf %90, %1 : vector<16x128xf32>
    %cst_74 = arith.constant 0.000000e+00 : f32
    %92 = vector.broadcast %cst_74 : f32 to vector<16x128xf32>
    %93 = arith.maximumf %91, %92 : vector<16x128xf32>
    %94 = arith.truncf %93 : vector<16x128xf32> to vector<16x128xbf16>
    %c0_75 = arith.constant 0 : index
    %c128_76 = arith.constant 128 : index
    %95 = vector.load %arg4[%c0_75, %c128_76] : memref<128x384xbf16, #tpu.memory_space<vmem>>, vector<128x256xbf16>
    %cst_77 = arith.constant dense<0.000000e+00> : vector<16x256xf32>
    %96 = tpu.matmul %94, %95, %cst_77 {dimension_numbers = #tpu.dot_dimension_numbers<[1], [0], [0], [1], [0, 0, 1, 1], [], []>} : vector<16x128xbf16>, vector<128x256xbf16>, vector<16x256xf32> -> vector<16x256xf32>
    %97 = arith.addf %96, %2 : vector<16x256xf32>
    %cst_78 = arith.constant 0.000000e+00 : f32
    %98 = vector.broadcast %cst_78 : f32 to vector<16x256xf32>
    %99 = arith.maximumf %97, %98 : vector<16x256xf32>
    %100 = arith.truncf %99 : vector<16x256xf32> to vector<16x256xbf16>
    %c0_79 = arith.constant 0 : index
    %c0_80 = arith.constant 0 : index
    %101 = vector.load %arg5[%c0_79, %c0_80] : memref<256x128xbf16, #tpu.memory_space<vmem>>, vector<256x128xbf16>
    %cst_81 = arith.constant dense<0.000000e+00> : vector<16x128xf32>
    %102 = tpu.matmul %100, %101, %cst_81 {dimension_numbers = #tpu.dot_dimension_numbers<[1], [0], [0], [1], [0, 0, 1, 1], [], []>} : vector<16x256xbf16>, vector<256x128xbf16>, vector<16x128xf32> -> vector<16x128xf32>
    %103 = arith.addf %102, %3 : vector<16x128xf32>
    %c0_82 = arith.constant 0 : index
    %104 = memref.load %arg1[%c0_82] : memref<1xi32, #tpu.memory_space<smem>>
    %105 = tpu.iota {dimensions = array<i32: 0>} : vector<16x1xi32>
    %106 = vector.broadcast %104 : i32 to vector<16x1xi32>
    %107 = arith.cmpi slt, %105, %106 : vector<16x1xi32>
    %cst_83 = arith.constant 0.000000e+00 : f32
    %108 = vector.shape_cast %107 : vector<16x1xi1> to vector<16x1xi1>
    %109 = vector.broadcast %108 : vector<16x1xi1> to vector<16x128xi1>
    %110 = vector.broadcast %cst_83 : f32 to vector<16x128xf32>
    %111 = arith.select %109, %103, %110 : vector<16x128xi1>, vector<16x128xf32>
    %112 = vector.shape_cast %111 : vector<16x128xf32> to vector<1x16x128xf32>
    %cst_84 = arith.constant dense<0.000000e+00> : vector<1xf32>
    %113 = vector.multi_reduction <add>, %112, %cst_84 [1, 2] : vector<1x16x128xf32> to vector<1xf32>
    %114 = vector.shape_cast %113 : vector<1xf32> to vector<1x1x1xf32>
    %115 = vector.extract %114[0, 0, 0] : f32 from vector<1x1x1xf32>
    %116 = vector.extract_strided_slice %111 {offsets = [0, 4], sizes = [16, 1], strides = [1, 1]} : vector<16x128xf32> to vector<16x1xf32>
    %117 = vector.shape_cast %116 : vector<16x1xf32> to vector<1x16x1xf32>
    %cst_85 = arith.constant dense<0.000000e+00> : vector<1xf32>
    %118 = vector.multi_reduction <add>, %117, %cst_85 [1, 2] : vector<1x16x1xf32> to vector<1xf32>
    %119 = vector.shape_cast %118 : vector<1xf32> to vector<1x1x1xf32>
    %120 = vector.extract %119[0, 0, 0] : f32 from vector<1x1x1xf32>
    %121 = arith.subf %115, %120 : f32
    %c0_86 = arith.constant 0 : index
    %122 = memref.load %arg2[%c0_86] : memref<1xf32, #tpu.memory_space<smem>>
    %123 = arith.mulf %121, %122 : f32
    %124 = vector.extract_strided_slice %103 {offsets = [0, 4], sizes = [16, 1], strides = [1, 1]} : vector<16x128xf32> to vector<16x1xf32>
    %125 = vector.broadcast %123 : f32 to vector<16x128xf32>
    %126 = arith.subf %103, %125 : vector<16x128xf32>
    %127 = vector.broadcast %124 : vector<16x1xf32> to vector<16x128xf32>
    %128 = arith.addf %127, %126 : vector<16x128xf32>
    %c0_87 = arith.constant 0 : index
    %c0_88 = arith.constant 0 : index
    %129 = vector.load %arg7[%c0_87, %c0_88] : memref<16x128xf32, #tpu.memory_space<vmem>>, vector<16x128xf32>
    tpu.vector_store %arg7[%c0_87, %c0_88], %128 {strides = array<i32>} : memref<16x128xf32, #tpu.memory_space<vmem>>, vector<16x128xf32>,
    return
  }
}

</mosaic_0001>

<bundles_post_ra>
// kernel: tpu_custom_call.1
= control target key start
LH: loop header
LB: loop body
LE: loop exit
PB: predicated region body
PF: predicated region fallthrough
CT: control target
= control target key end

     0   :  { %14 = vsyncpa [#allocation8], 0  ;;  %s1140_s0 = inlined_call_operand.vmem [shape: s32[16], index: 0, kind: input, shape index: {}]   ;;  %s1141_s1 = inlined_call_operand.<no memory space> [shape: s32[1], index: 1, kind: input, shape index: {}]   ;;  %s1142_s2 = inlined_call_operand.<no memory space> [shape: f32[1], index: 2, kind: input, shape index: {}]   ;;  %s1143_s3 = inlined_call_operand.hbm [shape: f32[16,1,128], index: 3, kind: input, shape index: {}]   ;;  %s1144_s4 = inlined_call_operand.hbm [shape: bf16[128,384], index: 4, kind: input, shape index: {}]   ;;  %s1145_s5 = inlined_call_operand.hbm [shape: bf16[256,128], index: 5, kind: input, shape index: {}]   ;;  %s1146_s6 = inlined_call_operand.hbm [shape: f32[16,640], index: 6, kind: input, shape index: {}]   ;;  %s1147_s7 = inlined_call_operand.hbm [shape: f32[16,128], index: 7, kind: output, shape index: {}]  }
   0x1   :  { %15 = vsyncpa [#allocation6], 0 }
   0x2   :  { %16 = vsyncpa [#allocation11], 0 }
   0x3   :  { %17 = vsyncpa [#allocation14], 0 }
   0x4   :  { %18 = vsyncpa [#allocation7], 0  ;;  %s1004_s24 = smov [#allocation10]   ;;  %s25_s28 = sshll.u32 %s1140_s0, 4  ;;  %s26_s28 = int_to_ptr.vmem [resolvable:$true] %s25_s28 }
   0x5   :  { %s50_s25 = sshll.u32 %s1004_s24, 4  ;;  %s51_s25 = int_to_ptr.vmem [resolvable:$true] %s50_s25 }
   0x6   :  { %s890_s29 = scalar_lea.vmem %s51_s25, 3072  ;;  %p895_p1 = scmp.lt.s32.totalorder %s51_s25, %s51_s25 }
   0x7   :  { %p891_p0 = scmp.ne.s32.totalorder %s51_s25, %s890_s29  ;;  %p896_p2 = scmp.lt.s32.totalorder %s890_s29, %s890_s29 }
   0x9   :  { %p897_p3 = por %p896_p2, %p895_p1 }
   0xb   :  { %p898_p4 = pnand %p897_p3, %p891_p0 }
   0xd   :  { %901 = shalt.err (!%p898_p4)
}
   0xe   :  { %s1005_s30 = smov 192   ;;  %s1006_s8 = smov 12  }
   0xf   :  { %56 = dma.hbm_to_vmem [thread:$0]  %s1144_s4, 3072, %s51_s25, [#allocation11], %s1005_s30, %s1005_s30, %s1006_s8  }
  0x10   :  { %s902_s11 = scalar_lea.vmem %s26_s28, 16  ;;  %p907_p6 = scmp.lt.s32.totalorder %s26_s28, %s26_s28 }
  0x11   :  { %p903_p5 = scmp.ne.s32.totalorder %s26_s28, %s902_s11  ;;  %p908_p7 = scmp.lt.s32.totalorder %s902_s11, %s902_s11 }
  0x13   :  { %p909_p8 = por %p908_p7, %p907_p6 }
  0x15   :  { %p910_p9 = pnand %p909_p8, %p903_p5 }
  0x17   :  { %913 = shalt.err (!%p910_p9)
}
  0x18   :  { %s1007_s0 = smov [#allocation5]   ;;  %s1008_s12 = smov [#allocation9]  }
  0x19   :  { %28 = dma.vmem_to_smem %s26_s28, 16, %s1007_s0, [#allocation8]  }
  0x1a   :  { %s38_s13 = sshll.u32 %s1008_s12, 4  ;;  %s39_s13 = int_to_ptr.vmem [resolvable:$true] %s38_s13 }
  0x1b   :  { %s922_s14 = scalar_lea.vmem %s39_s13, 256  ;;  %p927_p11 = scmp.lt.s32.totalorder %s39_s13, %s39_s13 }
  0x1c   :  { %p923_p10 = scmp.ne.s32.totalorder %s39_s13, %s922_s14  ;;  %p928_p12 = scmp.lt.s32.totalorder %s922_s14, %s922_s14 }
  0x1e   :  { %p929_p13 = por %p928_p12, %p927_p11 }
  0x20   :  { %p930_p0 = pnand %p929_p13, %p923_p10 }
  0x22   :  { %933 = shalt.err (!%p930_p0)
}
  0x23   :  { %s1009_s4 = smov 16   ;;  %s1010_s15 = smov 1  }
  0x24   :  { %44 = dma.hbm_to_vmem [thread:$0]  %s1143_s3, 256, %s39_s13, [#allocation6], %s1009_s4, %s1009_s4, %s1010_s15  }
  0x25   :  { %s1011_s18 = smov [#allocation12]  }
  0x26   :  { %s62_s19 = sshll.u32 %s1011_s18, 4  ;;  %s63_s19 = int_to_ptr.vmem [resolvable:$true] %s62_s19 }
  0x27   :  { %s942_s20 = scalar_lea.vmem %s63_s19, 2048  ;;  %p947_p2 = scmp.lt.s32.totalorder %s63_s19, %s63_s19 }
  0x28   :  { %p943_p1 = scmp.ne.s32.totalorder %s63_s19, %s942_s20  ;;  %p948_p3 = scmp.lt.s32.totalorder %s942_s20, %s942_s20 }
  0x2a   :  { %p949_p4 = por %p948_p3, %p947_p2 }
  0x2c   :  { %p950_p5 = pnand %p949_p4, %p943_p1 }
  0x2e   :  { %953 = shalt.err (!%p950_p5)
}
  0x2f   :  { %s1012_s21 = smov 64   ;;  %s1013_s22 = smov 4  }
  0x30   :  { %68 = dma.hbm_to_vmem [thread:$0]  %s1145_s5, 2048, %s63_s19, [#allocation11], %s1012_s21, %s1012_s21, %s1013_s22  }
  0x31   :  { %s1014_s25 = smov [#allocation13]  }
  0x32   :  { %s74_s26 = sshll.u32 %s1014_s25, 4  ;;  %s75_s26 = int_to_ptr.vmem [resolvable:$true] %s74_s26 }
  0x33   :  { %s962_s3 = scalar_lea.vmem %s75_s26, 1280  ;;  %p967_p7 = scmp.lt.s32.totalorder %s75_s26, %s75_s26 }
  0x34   :  { %p963_p6 = scmp.ne.s32.totalorder %s75_s26, %s962_s3  ;;  %p968_p8 = scmp.lt.s32.totalorder %s962_s3, %s962_s3 }
  0x36   :  { %p969_p9 = por %p968_p8, %p967_p7 }
  0x38   :  { %p970_p10 = pnand %p969_p9, %p963_p6 }
  0x3a   :  { %973 = shalt.err (!%p970_p10)
}
  0x3b   :  { %s1015_s27 = smov 640   ;;  %s1016_s28 = smov 40  }
  0x3c   :  { %80 = dma.hbm_to_vmem [thread:$0]  %s1146_s6, 1280, %s75_s26, [#allocation14], %s1015_s27, %s1015_s27, %s1016_s28  }
  0x3d   :  { %994 = dma.done.wait [#allocation8], 16  }
  0x3e   :  { %995 = vsyncadd [#allocation8], 4294967280 }
  0x3f   :  { %996 = dma.done.wait [#allocation6], 256  }
  0x40   :  { %997 = vsyncadd [#allocation6], 4294967040 }
  0x41   :  { %998 = dma.done.wait [#allocation11], 5120  }
  0x42   :  { %999 = vsyncadd [#allocation11], 4294962176 }
  0x43   :  { %1000 = dma.done.wait [#allocation14], 1280  }
  0x44   :  { %1001 = vsyncadd [#allocation14], 4294966016 }
  0x45   :  { %96 = sfence }
  0x46   :  { %v1017_v0 = vmov 0.0   ;;  %v834_v1 = vld [vmem:[#allocation10 + $0xa8] ss:$12 sps:$4 sm:$0xff]   ;;  %vm1018_vm0 = vmmov 0   ;;  %v835_v2 = vld [vmem:[#allocation10 + $0x90] ss:$12 sps:$4 sm:$0xff]  }
  0x47   :  { %787 = vmatprep.subr.bf16.mxu0 %v1017_v0  ;;  %803 = vmatprep.mubr.msk.bf16.mxu0 %vm1018_vm0, %v1017_v0  ;;  %v836_v3 = vld [vmem:[#allocation10 + $0x78] ss:$12 sps:$4 sm:$0xff]   ;;  %s108_s5 = sld [smem:[#allocation5]]  ;;  %v842_v4 = vld [vmem:[#allocation10 + $0xb0] ss:$12 sps:$4 sm:$0xff]   ;;  %v99_v38 = vld [vmem:[#allocation13 + $0x28] sm:$0xff] }
  0x48   :  { %788 = vmatpush3.bf16.msra.mxu0 %v834_v1  ;;  %s701_s6 = sld [smem:[#allocation5 + $0x1]]  ;;  %v844_v5 = vld [vmem:[#allocation10 + $0xac] ss:$12 sps:$4 sm:$0xff]   ;;  %383 = vmatprep.subr.bf16.mxu1 %v842_v4  ;;  %v847_v8 = vld [vmem:[#allocation10 + $0x94] ss:$12 sps:$4 sm:$0xff]   ;;  %v1019_v50 = vmov 0  }
  0x49   :  { %789 = vmatprep.subr.bf16.mxu0 %v1017_v0  ;;  %s1084_s8 = sld [smem:[#allocation5 + $0x2]]  ;;  %v837_v6 = vld [vmem:[#allocation10 + $0x60] ss:$12 sps:$4 sm:$0xff]   ;;  %v845_v7 = vld [vmem:[#allocation10 + $0x98] ss:$12 sps:$4 sm:$0xff]   ;;  %384 = vmatpush1.bf16.msra.mxu1 %v844_v5  ;;  %v868_v53 = vld [vmem:[#allocation12 + $0x70] sm:$0xff]  }
  0x4a   :  { %s1086_s9 = sld [smem:[#allocation5 + $0x3]]  ;;  %v838_v9 = vld [vmem:[#allocation10 + $0x48] ss:$12 sps:$4 sm:$0xff]   ;;  %385 = vmatprep.subr.bf16.mxu1 %v845_v7  ;;  %v848_v10 = vld [vmem:[#allocation10 + $0x80] ss:$12 sps:$4 sm:$0xff]   ;;  %415 = vmatprep.mubr.bf16.mxu1 %v1019_v50  ;;  %v866_v51 = vld [vmem:[#allocation12 + $0x78] sm:$0xff]  }
  0x4b   :  { %s1089_s10 = sld [smem:[#allocation5 + $0x4]]  ;;  %v850_v11 = vld [vmem:[#allocation10 + $0x7c] ss:$12 sps:$4 sm:$0xff]   ;;  %v840_v20 = vld [vmem:[#allocation10 + $0x18] ss:$12 sps:$4 sm:$0xff]   ;;  %v869_v54 = vld [vmem:[#allocation12 + $0x30] sm:$0xff]  }
  0x4c   :  { %790 = vmatpush3.bf16.msra.mxu0 %v835_v2  ;;  %s1091_s11 = sld [smem:[#allocation5 + $0x5]]  ;;  %v851_v13 = vld [vmem:[#allocation10 + $0x68] ss:$12 sps:$4 sm:$0xff]   ;;  %v839_v15 = vld [vmem:[#allocation10 + $0x30] ss:$12 sps:$4 sm:$0xff]   ;;  %v98_v34 = vld [vmem:[#allocation13] sm:$0xff] }
  0x4d   :  { %791 = vmatprep.subr.bf16.mxu0 %v1017_v0  ;;  %s1093_s0 = sld [smem:[#allocation5 + $0x6]]  ;;  %s109_s12 = scalar_lea.vmem [#allocation9], %s108_s5  ;;  %386 = vmatpush1.bf16.msra.mxu1 %v847_v8  ;;  %v853_v25 = vld [vmem:[#allocation10 + $0x64] ss:$12 sps:$4 sm:$0xff]   ;;  %v841_v26 = vld [vmem:[#allocation10] ss:$12 sps:$4 sm:$0xff]  }
  0x4e   :  { %v110_v12 = vld [vmem:[%s109_s12] sm:$0x1]  ;;  %s1095_s13 = sld [smem:[#allocation5 + $0x7]]  ;;  %s113_s14 = scalar_lea.vmem [#allocation9], %s701_s6  ;;  %387 = vmatprep.subr.bf16.mxu1 %v848_v10  ;;  %v854_v28 = vld [vmem:[#allocation10 + $0x50] ss:$12 sps:$4 sm:$0xff]  }
  0x4f   :  { %111 = vst [vmem:[#allocation2] sm:$0x1] %v110_v12  ;;  %v114_v14 = vld [vmem:[%s113_s14] sm:$0x1]  ;;  %s1098_s4 = sld [smem:[#allocation5 + $0x8]]  ;;  %s117_s15 = scalar_lea.vmem [#allocation9], %s1084_s8 }
  0x50   :  { %792 = vmatpush3.bf16.msra.mxu0 %v836_v3  ;;  %115 = vst [vmem:[#allocation2 + $0x1] sm:$0x1] %v114_v14  ;;  %v118_v16 = vld [vmem:[%s117_s15] sm:$0x1]  ;;  %s1101_s16 = sld [smem:[#allocation5 + $0x9]]  ;;  %s121_s17 = scalar_lea.vmem [#allocation9], %s1086_s9 }
  0x51   :  { %793 = vmatprep.subr.bf16.mxu0 %v1017_v0  ;;  %119 = vst [vmem:[#allocation2 + $0x2] sm:$0x1] %v118_v16  ;;  %v122_v17 = vld [vmem:[%s121_s17] sm:$0x1]  ;;  %s1104_s18 = sld [smem:[#allocation5 + $0xa]]  ;;  %s125_s19 = scalar_lea.vmem [#allocation9], %s1089_s10  ;;  %388 = vmatpush1.bf16.msra.mxu1 %v850_v11 }
  0x52   :  { %123 = vst [vmem:[#allocation2 + $0x3] sm:$0x1] %v122_v17  ;;  %v126_v18 = vld [vmem:[%s125_s19] sm:$0x1]  ;;  %s1107_s20 = sld [smem:[#allocation5 + $0xb]]  ;;  %s129_s21 = scalar_lea.vmem [#allocation9], %s1091_s11  ;;  %389 = vmatprep.subr.bf16.mxu1 %v851_v13 }
  0x53   :  { %127 = vst [vmem:[#allocation2 + $0x4] sm:$0x1] %v126_v18  ;;  %v130_v19 = vld [vmem:[%s129_s21] sm:$0x1]  ;;  %s1111_s22 = sld [smem:[#allocation5 + $0xc]]  ;;  %s133_s23 = scalar_lea.vmem [#allocation9], %s1093_s0 }
  0x54   :  { %794 = vmatpush3.bf16.msra.mxu0 %v837_v6  ;;  %131 = vst [vmem:[#allocation2 + $0x5] sm:$0x1] %v130_v19  ;;  %v134_v21 = vld [vmem:[%s133_s23] sm:$0x1]  ;;  %s1114_s24 = sld [smem:[#allocation5 + $0xd]]  ;;  %s137_s25 = scalar_lea.vmem [#allocation9], %s1095_s13 }
  0x55   :  { %795 = vmatprep.subr.bf16.mxu0 %v1017_v0  ;;  %135 = vst [vmem:[#allocation2 + $0x6] sm:$0x1] %v134_v21  ;;  %v138_v22 = vld [vmem:[%s137_s25] sm:$0x1]  ;;  %s1117_s26 = sld [smem:[#allocation5 + $0xe]]  ;;  %s141_s3 = scalar_lea.vmem [#allocation9], %s1098_s4  ;;  %390 = vmatpush1.bf16.msra.mxu1 %v853_v25 }
  0x56   :  { %139 = vst [vmem:[#allocation2 + $0x7] sm:$0x1] %v138_v22  ;;  %v142_v23 = vld [vmem:[%s141_s3] sm:$0x1]  ;;  %s1120_s27 = sld [smem:[#allocation5 + $0xf]]  ;;  %s145_s28 = scalar_lea.vmem [#allocation9], %s1101_s16  ;;  %391 = vmatprep.subr.bf16.mxu1 %v854_v28 }
  0x57   :  { %143 = vst [vmem:[#allocation2 + $0x8] sm:$0x1] %v142_v23  ;;  %v146_v24 = vld [vmem:[%s145_s28] sm:$0x1]  ;;  %s149_s29 = scalar_lea.vmem [#allocation9], %s1104_s18  ;;  %v867_v52 = vld [vmem:[#allocation12 + $0x38] sm:$0xff]  }
  0x58   :  { %796 = vmatpush3.bf16.msra.mxu0 %v838_v9  ;;  %147 = vst [vmem:[#allocation2 + $0x9] sm:$0x1] %v146_v24  ;;  %v150_v27 = vld [vmem:[%s149_s29] sm:$0x1]  ;;  %s153_s30 = scalar_lea.vmem [#allocation9], %s1107_s20  ;;  %v870_v55 = vld [vmem:[#allocation12 + $0x68] sm:$0xff]  }
  0x59   :  { %797 = vmatprep.subr.bf16.mxu0 %v1017_v0  ;;  %151 = vst [vmem:[#allocation2 + $0xa] sm:$0x1] %v150_v27  ;;  %v154_v29 = vld [vmem:[%s153_s30] sm:$0x1]  ;;  %v856_v30 = vld [vmem:[#allocation10 + $0x4c] ss:$12 sps:$4 sm:$0xff]  }
  0x5a   :  { %155 = vst [vmem:[#allocation2 + $0xb] sm:$0x1] %v154_v29  ;;  %s157_s5 = scalar_lea.vmem [#allocation9], %s1111_s22  ;;  %v857_v32 = vld [vmem:[#allocation10 + $0x38] ss:$12 sps:$4 sm:$0xff]   ;;  %s161_s6 = scalar_lea.vmem [#allocation9], %s1114_s24  ;;  %392 = vmatpush1.bf16.msra.mxu1 %v856_v30 }
  0x5b   :  { %v158_v31 = vld [vmem:[%s157_s5] sm:$0x1]  ;;  %s165_s8 = scalar_lea.vmem [#allocation9], %s1117_s26  ;;  %393 = vmatprep.subr.bf16.mxu1 %v857_v32  ;;  %v862_v47 = vld [vmem:[#allocation10 + $0x1c] ss:$12 sps:$4 sm:$0xff]   ;;  %v876_v8 = vld [vmem:[#allocation12 + $0x50] sm:$0xff]  }
  0x5c   :  { %798 = vmatpush3.bf16.msra.mxu0 %v839_v15  ;;  %159 = vst [vmem:[#allocation2 + $0xc] sm:$0x1] %v158_v31  ;;  %v162_v33 = vld [vmem:[%s161_s6] sm:$0x1]  ;;  %s169_s9 = scalar_lea.vmem [#allocation9], %s1120_s27  ;;  %v871_v56 = vld [vmem:[#allocation12 + $0x28] sm:$0xff]  }
  0x5d   :  { %799 = vmatprep.subr.bf16.mxu0 %v1017_v0  ;;  %163 = vst [vmem:[#allocation2 + $0xd] sm:$0x1] %v162_v33  ;;  %v166_v35 = vld [vmem:[%s165_s8] sm:$0x1]  ;;  %v863_v48 = vld [vmem:[#allocation10 + $0x8] ss:$12 sps:$4 sm:$0xff]   ;;  %v602_v33 = vlaneseq }
  0x5e   :  { %167 = vst [vmem:[#allocation2 + $0xe] sm:$0x1] %v166_v35  ;;  %v170_v36 = vld [vmem:[%s169_s9] sm:$0x1]  ;;  %v865_v49 = vld [vmem:[#allocation10 + $0x4] ss:$12 sps:$4 sm:$0xff]  }
  0x5f   :  { %v172_v37 = vld [vmem:[#allocation2] sm:$0xff]  ;;  %171 = vst [vmem:[#allocation2 + $0xf] sm:$0x1] %v170_v36  ;;  %v874_v59 = vld [vmem:[#allocation12 + $0x58] sm:$0xff]   ;;  %v100_v61 = vld [vmem:[#allocation13 + $0x8] sm:$0xff]  ;;  %v1020_v32 = vmov 4   ;;  %v605_v36 = vstv %s1141_s1 }
  0x60   :  { %800 = vmatpush3.bf16.msra.mxu0 %v840_v20  ;;  %v174_v39 = vadd.f32 %v172_v37, %v98_v34  ;;  %v859_v45 = vld [vmem:[#allocation10 + $0x34] ss:$12 sps:$4 sm:$0xff]   ;;  %v875_v60 = vld [vmem:[#allocation12 + $0x18] sm:$0xff]   ;;  %v878_v10 = vld [vmem:[#allocation12 + $0x48] sm:$0xff]   ;;  %832 = vset.pattern.permute.xlu0 %v1020_v32  ;;  %v603_v35 = vshrl.u32 %v602_v33, 7  ;;  %s1021_s0 = smov 124  }
  0x61   :  { %801 = vmatprep.subr.bf16.mxu0 %v1017_v0  ;;  %394 = vmatpush1.bf16.msra.mxu1 %v859_v45  ;;  %v860_v46 = vld [vmem:[#allocation10 + $0x20] ss:$12 sps:$4 sm:$0xff]   ;;  %v101_v0 = vld [vmem:[#allocation13 + $0x30] sm:$0xff]  ;;  %v103_v15 = vld [vmem:[#allocation13 + $0x18] sm:$0xff]  ;;  %vm632_vm3 = vcmask 7168   ;;  %s1022_s16 = smov [#allocation15]  }
  0x62   :  { %v176_v41 = vmax.f32 %v174_v39, 0.0  ;;  %395 = vmatprep.subr.bf16.mxu1 %v860_v46  ;;  %v872_v57 = vld [vmem:[#allocation12 + $0x60] sm:$0xff]   ;;  %v877_v9 = vld [vmem:[#allocation12 + $0x10] sm:$0xff]   ;;  %v879_v11 = vld [vmem:[#allocation12 + $0x8] sm:$0xff]   ;;  %833 = vset.pattern.permute.xlu1 %v1020_v32  ;;  %vm606_vm1 = vcmp.lt.s32.totalorder %v603_v35, %v605_v36  ;;  %s670_s17 = sshll.u32 %s1022_s16, 4  ;;  %s671_s17 = int_to_ptr.vmem [resolvable:$true] %s670_s17 }
  0x63   :  { %v873_v58 = vld [vmem:[#allocation12 + $0x20] sm:$0xff]   ;;  %v104_v17 = vld [vmem:[#allocation13 + $0x38] sm:$0xff]  ;;  %v102_v18 = vld [vmem:[#allocation13 + $0x10] sm:$0xff]  ;;  %s974_s18 = scalar_lea.vmem %s671_s17, 256  ;;  %p979_p12 = scmp.lt.s32.totalorder %s671_s17, %s671_s17 }
  0x64   :  { %802 = vmatpush3.bf16.msra.mxu0 %v841_v26  ;;  %v880_v12 = vld [vmem:[#allocation12 + $0x40] sm:$0xff]   ;;  %p975_p11 = scmp.ne.s32.totalorder %s671_s17, %s974_s18  ;;  %p980_p13 = scmp.lt.s32.totalorder %s974_s18, %s974_s18 }
  0x65   :  { %396 = vmatpush1.bf16.msra.mxu1 %v862_v47  ;;  %765 = vmatprep.subr.bf16.mxu0 %v866_v51  ;;  %v881_v13 = vld [vmem:[#allocation12] sm:$0xff]  }
  0x66   :  { %v173_v40 = vld [vmem:[#allocation2 + $0x8] sm:$0xff]  ;;  %397 = vmatprep.subr.bf16.mxu1 %v863_v48  ;;  %v105_v20 = vld [vmem:[#allocation13 + $0x40] sm:$0xff]  ;;  %p981_p0 = por %p980_p13, %p979_p12 }
  0x67   :  { %v175_v42 = vadd.f32 %v173_v40, %v99_v38  ;;  %v106_v37 = vld [vmem:[#allocation13 + $0x20] sm:$0xff] }
  0x68   :  { %p982_p1 = pnand %p981_p0, %p975_p11 }
  0x69   :  { %v177_v43 = vmax.f32 %v175_v42, 0.0  ;;  %398 = vmatpush1.bf16.msra.mxu1 %v865_v49 }
  0x6b   :  { %v178_v44 = vpack.c.bf16 %v177_v43, %v176_v41  ;;  %v604_v41 = vadd.s32 8, %v603_v35  ;;  %v107_v43 = vld [vmem:[#allocation13 + $0x48] sm:$0xff] }
  0x6d   :  { %804 = vmatmul.mubr.bf16.vlgmr.msra.gmra.mxu0 %v178_v44  ;;  %vm607_vm2 = vcmp.lt.s32.totalorder %v604_v41, %v605_v36 }
  0x6e   :  { %766 = vmatpush3.bf16.msra.mxu0 %v867_v52 }
  0x6f   :  { %767 = vmatprep.subr.bf16.mxu0 %v868_v53 }
  0x72   :  { %768 = vmatpush3.bf16.msra.mxu0 %v869_v54 }
  0x73   :  { %769 = vmatprep.subr.bf16.mxu0 %v870_v55 }
  0x76   :  { %770 = vmatpush3.bf16.msra.mxu0 %v871_v56 }
  0x77   :  { %771 = vmatprep.subr.bf16.mxu0 %v872_v57 }
  0x7a   :  { %772 = vmatpush3.bf16.msra.mxu0 %v873_v58 }
  0x7b   :  { %773 = vmatprep.subr.bf16.mxu0 %v874_v59 }
  0x7e   :  { %774 = vmatpush3.bf16.msra.mxu0 %v875_v60 }
  0x7f   :  { %775 = vmatprep.subr.bf16.mxu0 %v876_v8 }
  0x82   :  { %776 = vmatpush3.bf16.msra.mxu0 %v877_v9 }
  0x83   :  { %777 = vmatprep.subr.bf16.mxu0 %v878_v10 }
  0x86   :  { %778 = vmatpush3.bf16.msra.mxu0 %v879_v11 }
  0x87   :  { %779 = vmatprep.subr.bf16.mxu0 %v880_v12 }
  0x8a   :  { %780 = vmatpush3.bf16.msra.mxu0 %v881_v13 }
 0x12d   :  { %v277_v62 = vpop.f32.mrf.mxu0 }
 0x12e   :  { %v278_v1 = vadd.f32 %v277_v62, %v100_v61 }
 0x12f   :  { %v805_v63 = vpop.f32.mrf.mxu0 }
 0x130   :  { %v284_v5 = vmax.f32 %v278_v1, 0.0 }
 0x131   :  { %v280_v2 = vpop.f32.mrf.mxu0 }
 0x132   :  { %v281_v3 = vadd.f32 %v280_v2, %v101_v0 }
 0x133   :  { %v806_v4 = vpop.f32.mrf.mxu0 }
 0x134   :  { %v285_v6 = vmax.f32 %v281_v3, 0.0 }
 0x136   :  { %v286_v7 = vpack.c.bf16 %v285_v6, %v284_v5 }
 0x138   :  { %416 = vmatmul.mubr.bf16.vlgmr.msra.gmra.mxu1 %v286_v7 }
 0x1f8   :  { %v417_v14 = vpop.f32.mrf.mxu1 }
 0x1f9   :  { %v418_v23 = vadd.f32 %v417_v14, %v102_v18 }
 0x1fa   :  { %v419_v16 = vpop.f32.mrf.mxu1 }
 0x1fb   :  { %v420_v21 = vadd.f32 %v419_v16, %v103_v15  ;;  %v426_v29 = vmax.f32 %v418_v23, 0.0 }
 0x1fc   :  { %v421_v19 = vpop.f32.mrf.mxu1 }
 0x1fd   :  { %v422_v22 = vadd.f32 %v421_v19, %v104_v17  ;;  %v427_v27 = vmax.f32 %v420_v21, 0.0 }
 0x1fe   :  { %v423_v24 = vpop.f32.mrf.mxu1 }
 0x1ff   :  { %v424_v25 = vadd.f32 %v423_v24, %v105_v20  ;;  %v428_v26 = vmax.f32 %v422_v22, 0.0 }
 0x201   :  { %v429_v28 = vmax.f32 %v424_v25, 0.0  ;;  %v430_v31 = vpack.c.bf16 %v428_v26, %v426_v29 }
 0x203   :  { %v431_v30 = vpack.c.bf16 %v429_v28, %v427_v27 }
 0x205   :  { %592 = vmatprep.mubr.bf16.mxu0 %v431_v30 }
 0x206   :  { %593 = vmatmul.mubr.bf16.vlgmr.msra.gmra.mxu0 %v430_v31 }
 0x2c6   :  { %v781_v34 = vpop.f32.mrf.mxu0 }
 0x2c8   :  { %v782_v38 = vpop.f32.mrf.mxu0 }
 0x2c9   :  { %v783_v39 = vadd.f32 %v782_v38, %v781_v34 }
 0x2ca   :  { %v784_v40 = vpop.f32.mrf.mxu0 }
 0x2cb   :  { %v595_v42 = vadd.f32 %v783_v39, %v106_v37 }
 0x2cc   :  { %v785_v44 = vpop.f32.mrf.mxu0 }
 0x2cd   :  { %v786_v45 = vadd.f32 %v785_v44, %v784_v40  ;;  %v612_v46 = vsel %vm606_vm1, %v595_v42, 0.0 }
 0x2ce   :  { %626 = vrot.lane.b32.xlu0 %v612_v46, %s1021_s0 }
 0x2cf   :  { %v598_v47 = vadd.f32 %v786_v45, %v107_v43 }
 0x2d1   :  { %v613_v48 = vsel %vm607_vm2, %v598_v47, 0.0 }
 0x2d2   :  { %628 = vrot.lane.b32.xlu0 %v613_v48, %s1021_s0  ;;  %v614_v49 = vadd.f32 %v613_v48, %v612_v46 }
 0x2d4   :  { %615 = vadd.xlane.f32.xlu1 %v614_v49 }
 0x2d6   :  { %653 = vperm.xlu0 %832, %v595_v42  }
 0x340   :  { %v627_v50 = vpop.permute.xlu0 %626 }
 0x341   :  { %v633_v52 = vsel %vm632_vm3, %v627_v50, 0.0 }
 0x344   :  { %v629_v51 = vpop.permute.xlu0 %628 }
 0x345   :  { %v634_v53 = vsel %vm632_vm3, %v629_v51, 0.0 }
 0x346   :  { %v635_v54 = vadd.f32 %v634_v53, %v633_v52 }
 0x348   :  { %636 = vadd.xlane.f32.xlu1 %v635_v54 }
 0x351   :  { %v654_v8 = vpop.permute.xlu0 %653 }
 0x359   :  { %658 = vperm.xlu1 %833, %v598_v47  }
 0x35d   :  { %v616_v55 = vpop.xlane.xlu1 %615 }
 0x35e   :  { %v617_v56 = vrot.slane %v616_v55, 4 }
 0x360   :  { %v618_v57 = vadd.f32 %v617_v56, %v616_v55 }
 0x362   :  { %v619_v58 = vrot.slane %v618_v57, 2 }
 0x364   :  { %v620_v59 = vadd.f32 %v619_v58, %v618_v57 }
 0x366   :  { %v621_v60 = vrot.slane %v620_v59, 1 }
 0x368   :  { %v622_v61 = vadd.f32 %v621_v60, %v620_v59 }
 0x36a   :  { %807 = vpush %v622_v61 }
 0x39b   :  { %s808_s1 = spop %807 }
 0x3d1   :  { %v637_v62 = vpop.xlane.xlu1 %636 }
 0x3d2   :  { %v638_v63 = vrot.slane %v637_v62, 4 }
 0x3d4   :  { %v639_v0 = vadd.f32 %v638_v63, %v637_v62 }
 0x3d5   :  { %v659_v9 = vpop.permute.xlu1 %658 }
 0x3d6   :  { %v640_v1 = vrot.slane %v639_v0, 2 }
 0x3d8   :  { %v641_v2 = vadd.f32 %v640_v1, %v639_v0 }
 0x3da   :  { %v642_v3 = vrot.slane %v641_v2, 1 }
 0x3dc   :  { %v643_v4 = vadd.f32 %v642_v3, %v641_v2 }
 0x3de   :  { %809 = vpush %v643_v4 }
 0x40f   :  { %s810_s12 = spop %809 }
 0x410   :  { %s645_s13 = ssub.f32 %s808_s1, %s810_s12 }
 0x412   :  { %s647_s15 = smul.f32 %s645_s13, %s1142_s2 }
 0x414   :  { %v648_v5 = vstv %s647_s15 }
 0x415   :  { %v649_v6 = vsub.f32 %v595_v42, %v648_v5  ;;  %v650_v7 = vsub.f32 %v598_v47, %v648_v5 }
 0x417   :  { %v661_v10 = vadd.f32 %v654_v8, %v649_v6  ;;  %v662_v11 = vadd.f32 %v659_v9, %v650_v7 }
 0x419   :  { %663 = vst [vmem:[#allocation15] sm:$0xff] %v661_v10  ;;  %664 = vst [vmem:[#allocation15 + $0x8] sm:$0xff] %v662_v11 }
 0x41a   :  { %985 = shalt.err (!%p982_p1)
}
 0x41b   :  { %s1023_s2 = smov 128   ;;  %s1024_s19 = smov 8  }
 0x41c   :  { %676 = dma.vmem_to_hbm [thread:$0]  %s671_s17, 256, %s1147_s7, [#allocation7], %s1023_s2, %s1023_s2, %s1024_s19  }
 0x41d   :  { %1002 = dma.done.wait [#allocation7], 256  }
 0x41e   :  { %1003 = vsyncadd [#allocation7], 4294967040 }
 0x41f   :  { %680 = vsyncpa [#allocation6], 1 }
 0x420   :  { %681 = vsyncpa [#allocation11], 1 }
 0x421   :  { %682 = vsyncpa [#allocation14], 1 }
 0x422   :  { %683 = vsyncpa [#allocation7], 1 }
 0x423   :  { %684 = vsyncpa [#allocation8], 1 }

</bundles_post_ra>
